<compile_context>
chip_gen: v7x
topology: tpu7x:2x2x1
jax: 0.10.0
libtpu: 0.0.40
codegen_flags: <defaults>
</compile_context>

<pallas_src>
import jax
import jax.numpy as jnp
from jax.experimental import pallas as pl
from jax.experimental.pallas import tpu as pltpu

STATE_DIM = 16
ACTION_DIM = 4
CRITIC_HIDDEN = 32          # stand-in for Hyper_Param['critic_num_neurons'] = [32]

_LANE = 128                 # batch tile granularity (batch occupies the lane dim)


# --------------------------------------------------------------------------- kernel

def _dense_t(h, w_ref, b_ref, relu):
    """Transposed dense: w_ref [M, K] (compute dtype), h [K, TB] -> [M, TB].

    MXU matmul in the weights' dtype with f32 accumulation; bias add + ReLU in
    f32 on the VPU.  Bias is [M, 1] and broadcasts across the 128-lane batch.
    """
    y = jnp.dot(w_ref[...], h.astype(w_ref.dtype),
                preferred_element_type=jnp.float32)
    y = y + b_ref[...]
    return jnp.maximum(y, 0.0) if relu else y


def _critic_kernel(x_ref, a_ref,
                   ws1, bs1, ws2, bs2,        # state encoder
                   wa1, ba1, wa2, ba2,        # action encoder
                   wq1, bq1, wq2, bq2,        # q estimator
                   out_ref):
    # Batch lives in the 128-lane dimension; features live in sublanes.
    s = _dense_t(_dense_t(x_ref[...], ws1, bs1, True), ws2, bs2, True)   # [32, TB]
    t = _dense_t(_dense_t(a_ref[...], wa1, ba1, True), wa2, ba2, True)   # [32, TB]
    emb = jnp.concatenate([s, t], axis=0)                                # [64, TB] sublane concat
    h = _dense_t(emb, wq1, bq1, True)                                    # [H, TB]
    q = _dense_t(h, wq2, bq2, False)                                     # [1, TB] lane-dense
    out_ref[...] = q.astype(out_ref.dtype)


# --------------------------------------------------------------------------- wrapper

def _prep_params(p, compute_dtype):
    """Transpose weights to [out, in] (compute dtype) and biases to [out, 1] (f32)."""
    def wt(w):
        return jnp.asarray(w).T.astype(compute_dtype)

    def bt(b):
        return jnp.asarray(b).reshape(-1, 1).astype(jnp.float32)

    args = []
    for n in ("s1", "s2", "a1", "a2", "q1", "q2"):
        args.append(wt(p["w" + n]))
        args.append(bt(p["b" + n]))
    return tuple(args)


def critic_forward(x, a, params, *, block_b=4096, compute_dtype=jnp.float32):
    """Critic(x, a) -> q of shape [B, 1]. params: dict from init_params()."""
    B = x.shape[0]
    dt = jnp.dtype(compute_dtype)

    # ---- batch tiling: batch is the lane dim -> tiles in multiples of 128 ----
    bp = ((B + _LANE - 1) // _LANE) * _LANE
    tb = max(_LANE, (min(block_b, bp) // _LANE) * _LANE)
    if bp >= 4 * _LANE:
        # Keep >=4 grid steps when the batch allows, so both v7x TensorCores get
        # work and each core still pipelines (harmless on single-TC v5e/v6e).
        tb = min(tb, max(_LANE, ((bp // 4) // _LANE) * _LANE))
    bp = ((bp + tb - 1) // tb) * tb
    grid = (bp // tb,)

    # ---- transposed, lane-padded inputs (no concatenated xa slab in HBM) ----
    x_t = jnp.pad(x.astype(dt).T, ((0, 0), (0, bp - B)))     # [STATE_DIM, bp]
    a_t = jnp.pad(a.astype(dt).T, ((0, 0), (0, bp - B)))     # [ACTION_DIM, bp]
    # NOTE: padded batch columns produce garbage (finite) q values; they are
    # sliced off below.  Do not reduce over the padded output.

    weight_args = _prep_params(params, dt)

    def batch_spec(d):
        return pl.BlockSpec((d, tb), lambda i: (0, i))

    def resident(w):
        return pl.BlockSpec(w.shape, lambda i: (0, 0))       # VMEM-resident across steps

    in_specs = ([batch_spec(STATE_DIM), batch_spec(ACTION_DIM)]
                + [resident(w) for w in weight_args])

    flops = 2 * bp * (STATE_DIM * 16 + 16 * 32 + ACTION_DIM * 8 + 8 * 32
                      + 64 * CRITIC_HIDDEN + CRITIC_HIDDEN * 1)
    bytes_accessed = (x_t.size * x_t.dtype.itemsize
                      + a_t.size * a_t.dtype.itemsize
                      + bp * 4
                      + sum(w.size * w.dtype.itemsize for w in weight_args))

    out = pl.pallas_call(
        _critic_kernel,
        out_shape=jax.ShapeDtypeStruct((1, bp), jnp.float32),
        grid_spec=pl.GridSpec(
            grid=grid,
            in_specs=in_specs,
            out_specs=pl.BlockSpec((1, tb), lambda i: (0, i)),  # lane-dense output blocks
        ),
        compiler_params=pltpu.CompilerParams(
            dimension_semantics=("parallel",)),                 # shards across TCs on v7x
        cost_estimate=pl.CostEstimate(
            flops=flops, transcendentals=0, bytes_accessed=bytes_accessed),
    )(x_t, a_t, *weight_args)

    return out[0, :B].reshape(B, 1)


# --------------------------------------------------------------------------- params / reference

def init_params(key):
    """Deterministic synthetic init (this is not a checkpoint load)."""
    def linear(key, fan_in, fan_out):
        kw, kb = jax.random.split(key)
        w = jax.random.normal(kw, (fan_in, fan_out), jnp.float32) * (1.0 / jnp.sqrt(fan_in))
        b = jax.random.normal(kb, (1, fan_out), jnp.float32) * 0.01
        return w, b

    keys = jax.random.split(key, 6)
    ws1, bs1 = linear(keys[0], STATE_DIM, 16)
    ws2, bs2 = linear(keys[1], 16, 32)
    wa1, ba1 = linear(keys[2], ACTION_DIM, 8)
    wa2, ba2 = linear(keys[3], 8, 32)
    wq1, bq1 = linear(keys[4], 64, CRITIC_HIDDEN)
    wq2, bq2 = linear(keys[5], CRITIC_HIDDEN, 1)
    return dict(ws1=ws1, bs1=bs1, ws2=ws2, bs2=bs2,
                wa1=wa1, ba1=ba1, wa2=wa2, ba2=ba2,
                wq1=wq1, bq1=bq1, wq2=wq2, bq2=bq2)


def critic_ref(x, a, p):
    """Pure-JAX reference matching the original (un-transposed) PyTorch forward."""
    relu = lambda v: jnp.maximum(v, 0.0)
    s = relu(relu(x @ p["ws1"] + p["bs1"]) @ p["ws2"] + p["bs2"])
    t = relu(relu(a @ p["wa1"] + p["ba1"]) @ p["wa2"] + p["ba2"])
    emb = jnp.concatenate([s, t], axis=-1)
    h = relu(emb @ p["wq1"] + p["bq1"])
    return h @ p["wq2"] + p["bq2"]


# --------------------------------------------------------------------------- demo

if __name__ == "__main__":
    key = jax.random.PRNGKey(0)
    kx, ka, kp = jax.random.split(key, 3)

    B = 200   # non-multiple of 128 -> exercises lane padding + output slicing
    x = jax.random.normal(kx, (B, STATE_DIM), jnp.float32)
    a = jax.random.normal(ka, (B, ACTION_DIM), jnp.float32)
    params = init_params(kp)

    q_ref = critic_ref(x, a, params)

    # f32 path, small tile (block_b=128 -> 2 pipelined, parallel grid steps).
    q = critic_forward(x, a, params, block_b=128, compute_dtype=jnp.float32)
    q = jax.block_until_ready(q)
    assert q.shape == (B, 1)
    assert jnp.allclose(q, q_ref, atol=1e-5, rtol=1e-5), "f32 mismatch vs JAX reference"

    # bf16 inputs/weights (f32 accumulation), default large tile (single grid step here).
    q_bf16 = critic_forward(x, a, params, compute_dtype=jnp.bfloat16)
    q_bf16 = jax.block_until_ready(q_bf16)
    assert q_bf16.shape == (B, 1)
    assert jnp.allclose(q_bf16, q_ref, atol=2e-1, rtol=2e-1), "bf16 path sanity check failed"

    print("KERNEL_OK")
</pallas_src>

<mosaic_0001>
module attributes {stable_mosaic.version = 11 : i64} {
  func.func @_critic_kernel(%arg0: i32, %arg1: memref<16x128xf32, #tpu.memory_space<vmem>>, %arg2: memref<4x128xf32, #tpu.memory_space<vmem>>, %arg3: memref<16x16xf32, #tpu.memory_space<vmem>>, %arg4: memref<16x1xf32, #tpu.memory_space<vmem>>, %arg5: memref<32x16xf32, #tpu.memory_space<vmem>>, %arg6: memref<32x1xf32, #tpu.memory_space<vmem>>, %arg7: memref<8x4xf32, #tpu.memory_space<vmem>>, %arg8: memref<8x1xf32, #tpu.memory_space<vmem>>, %arg9: memref<32x8xf32, #tpu.memory_space<vmem>>, %arg10: memref<32x1xf32, #tpu.memory_space<vmem>>, %arg11: memref<32x64xf32, #tpu.memory_space<vmem>>, %arg12: memref<32x1xf32, #tpu.memory_space<vmem>>, %arg13: memref<1x32xf32, #tpu.memory_space<vmem>>, %arg14: memref<1x1xf32, #tpu.memory_space<vmem>>, %arg15: memref<1x128xf32, #tpu.memory_space<vmem>>) attributes {dimension_semantics = [#tpu.dimension_semantics<parallel>], iteration_bounds = array<i64: 2>, scalar_prefetch = 0 : i64, scratch_operands = 0 : i64, tpu.core_type = #tpu.core_type<tc>, window_params = [{transform_indices = @transform_0, window_bounds = array<i64: 16, 128>}, {transform_indices = @transform_1, window_bounds = array<i64: 4, 128>}, {pipeline_mode = #tpu.pipeline_mode<synchronous>, transform_indices = @transform_2, window_bounds = array<i64: 16, 16>}, {pipeline_mode = #tpu.pipeline_mode<synchronous>, transform_indices = @transform_3, window_bounds = array<i64: 16, 1>}, {pipeline_mode = #tpu.pipeline_mode<synchronous>, transform_indices = @transform_4, window_bounds = array<i64: 32, 16>}, {pipeline_mode = #tpu.pipeline_mode<synchronous>, transform_indices = @transform_5, window_bounds = array<i64: 32, 1>}, {pipeline_mode = #tpu.pipeline_mode<synchronous>, transform_indices = @transform_6, window_bounds = array<i64: 8, 4>}, {pipeline_mode = #tpu.pipeline_mode<synchronous>, transform_indices = @transform_7, window_bounds = array<i64: 8, 1>}, {pipeline_mode = #tpu.pipeline_mode<synchronous>, transform_indices = @transform_8, window_bounds = array<i64: 32, 8>}, {pipeline_mode = #tpu.pipeline_mode<synchronous>, transform_indices = @transform_9, window_bounds = array<i64: 32, 1>}, {pipeline_mode = #tpu.pipeline_mode<synchronous>, transform_indices = @transform_10, window_bounds = array<i64: 32, 64>}, {pipeline_mode = #tpu.pipeline_mode<synchronous>, transform_indices = @transform_11, window_bounds = array<i64: 32, 1>}, {pipeline_mode = #tpu.pipeline_mode<synchronous>, transform_indices = @transform_12, window_bounds = array<i64: 1, 32>}, {pipeline_mode = #tpu.pipeline_mode<synchronous>, transform_indices = @transform_13, window_bounds = array<i64: 1, 1>}, {transform_indices = @transform_14, window_bounds = array<i64: 1, 128>}]} {
    %c0 = arith.constant 0 : index
    %c0_0 = arith.constant 0 : index
    %0 = vector.load %arg1[%c0, %c0_0] : memref<16x128xf32, #tpu.memory_space<vmem>>, vector<16x128xf32>
    %c0_1 = arith.constant 0 : index
    %c0_2 = arith.constant 0 : index
    %1 = vector.load %arg3[%c0_1, %c0_2] : memref<16x16xf32, #tpu.memory_space<vmem>>, vector<16x16xf32>
    %cst = arith.constant dense<0.000000e+00> : vector<16x128xf32>
    %2 = tpu.matmul %1, %0, %cst {dimension_numbers = #tpu.dot_dimension_numbers<[1], [0], [0], [1], [0, 0, 1, 1], [], []>} : vector<16x16xf32>, vector<16x128xf32>, vector<16x128xf32> -> vector<16x128xf32>
    %c0_3 = arith.constant 0 : index
    %c0_4 = arith.constant 0 : index
    %3 = vector.load %arg4[%c0_3, %c0_4] : memref<16x1xf32, #tpu.memory_space<vmem>>, vector<16x1xf32>
    %4 = vector.broadcast %3 : vector<16x1xf32> to vector<16x128xf32>
    %5 = arith.addf %2, %4 : vector<16x128xf32>
    %cst_5 = arith.constant 0.000000e+00 : f32
    %6 = vector.broadcast %cst_5 : f32 to vector<16x128xf32>
    %7 = arith.maximumf %5, %6 : vector<16x128xf32>
    %c0_6 = arith.constant 0 : index
    %c0_7 = arith.constant 0 : index
    %8 = vector.load %arg5[%c0_6, %c0_7] : memref<32x16xf32, #tpu.memory_space<vmem>>, vector<32x16xf32>
    %cst_8 = arith.constant dense<0.000000e+00> : vector<32x128xf32>
    %9 = tpu.matmul %8, %7, %cst_8 {dimension_numbers = #tpu.dot_dimension_numbers<[1], [0], [0], [1], [0, 0, 1, 1], [], []>} : vector<32x16xf32>, vector<16x128xf32>, vector<32x128xf32> -> vector<32x128xf32>
    %c0_9 = arith.constant 0 : index
    %c0_10 = arith.constant 0 : index
    %10 = vector.load %arg6[%c0_9, %c0_10] : memref<32x1xf32, #tpu.memory_space<vmem>>, vector<32x1xf32>
    %11 = vector.broadcast %10 : vector<32x1xf32> to vector<32x128xf32>
    %12 = arith.addf %9, %11 : vector<32x128xf32>
    %cst_11 = arith.constant 0.000000e+00 : f32
    %13 = vector.broadcast %cst_11 : f32 to vector<32x128xf32>
    %14 = arith.maximumf %12, %13 : vector<32x128xf32>
    %c0_12 = arith.constant 0 : index
    %c0_13 = arith.constant 0 : index
    %15 = vector.load %arg2[%c0_12, %c0_13] : memref<4x128xf32, #tpu.memory_space<vmem>>, vector<4x128xf32>
    %c0_14 = arith.constant 0 : index
    %c0_15 = arith.constant 0 : index
    %16 = vector.load %arg7[%c0_14, %c0_15] : memref<8x4xf32, #tpu.memory_space<vmem>>, vector<8x4xf32>
    %cst_16 = arith.constant dense<0.000000e+00> : vector<8x128xf32>
    %17 = tpu.matmul %16, %15, %cst_16 {dimension_numbers = #tpu.dot_dimension_numbers<[1], [0], [0], [1], [0, 0, 1, 1], [], []>} : vector<8x4xf32>, vector<4x128xf32>, vector<8x128xf32> -> vector<8x128xf32>
    %c0_17 = arith.constant 0 : index
    %c0_18 = arith.constant 0 : index
    %18 = vector.load %arg8[%c0_17, %c0_18] : memref<8x1xf32, #tpu.memory_space<vmem>>, vector<8x1xf32>
    %19 = vector.broadcast %18 : vector<8x1xf32> to vector<8x128xf32>
    %20 = arith.addf %17, %19 : vector<8x128xf32>
    %cst_19 = arith.constant 0.000000e+00 : f32
    %21 = vector.broadcast %cst_19 : f32 to vector<8x128xf32>
    %22 = arith.maximumf %20, %21 : vector<8x128xf32>
    %c0_20 = arith.constant 0 : index
    %c0_21 = arith.constant 0 : index
    %23 = vector.load %arg9[%c0_20, %c0_21] : memref<32x8xf32, #tpu.memory_space<vmem>>, vector<32x8xf32>
    %cst_22 = arith.constant dense<0.000000e+00> : vector<32x128xf32>
    %24 = tpu.matmul %23, %22, %cst_22 {dimension_numbers = #tpu.dot_dimension_numbers<[1], [0], [0], [1], [0, 0, 1, 1], [], []>} : vector<32x8xf32>, vector<8x128xf32>, vector<32x128xf32> -> vector<32x128xf32>
    %c0_23 = arith.constant 0 : index
    %c0_24 = arith.constant 0 : index
    %25 = vector.load %arg10[%c0_23, %c0_24] : memref<32x1xf32, #tpu.memory_space<vmem>>, vector<32x1xf32>
    %26 = vector.broadcast %25 : vector<32x1xf32> to vector<32x128xf32>
    %27 = arith.addf %24, %26 : vector<32x128xf32>
    %cst_25 = arith.constant 0.000000e+00 : f32
    %28 = vector.broadcast %cst_25 : f32 to vector<32x128xf32>
    %29 = arith.maximumf %27, %28 : vector<32x128xf32>
    %30 = tpu.concatenate %14, %29 in 0 : vector<32x128xf32>, vector<32x128xf32> -> vector<64x128xf32>
    %c0_26 = arith.constant 0 : index
    %c0_27 = arith.constant 0 : index
    %31 = vector.load %arg11[%c0_26, %c0_27] : memref<32x64xf32, #tpu.memory_space<vmem>>, vector<32x64xf32>
    %cst_28 = arith.constant dense<0.000000e+00> : vector<32x128xf32>
    %32 = tpu.matmul %31, %30, %cst_28 {dimension_numbers = #tpu.dot_dimension_numbers<[1], [0], [0], [1], [0, 0, 1, 1], [], []>} : vector<32x64xf32>, vector<64x128xf32>, vector<32x128xf32> -> vector<32x128xf32>
    %c0_29 = arith.constant 0 : index
    %c0_30 = arith.constant 0 : index
    %33 = vector.load %arg12[%c0_29, %c0_30] : memref<32x1xf32, #tpu.memory_space<vmem>>, vector<32x1xf32>
    %34 = vector.broadcast %33 : vector<32x1xf32> to vector<32x128xf32>
    %35 = arith.addf %32, %34 : vector<32x128xf32>
    %cst_31 = arith.constant 0.000000e+00 : f32
    %36 = vector.broadcast %cst_31 : f32 to vector<32x128xf32>
    %37 = arith.maximumf %35, %36 : vector<32x128xf32>
    %c0_32 = arith.constant 0 : index
    %c0_33 = arith.constant 0 : index
    %38 = vector.load %arg13[%c0_32, %c0_33] : memref<1x32xf32, #tpu.memory_space<vmem>>, vector<1x32xf32>
    %cst_34 = arith.constant dense<0.000000e+00> : vector<1x128xf32>
    %39 = tpu.matmul %38, %37, %cst_34 {dimension_numbers = #tpu.dot_dimension_numbers<[1], [0], [0], [1], [0, 0, 1, 1], [], []>} : vector<1x32xf32>, vector<32x128xf32>, vector<1x128xf32> -> vector<1x128xf32>
    %c0_35 = arith.constant 0 : index
    %c0_36 = arith.constant 0 : index
    %40 = vector.load %arg14[%c0_35, %c0_36] : memref<1x1xf32, #tpu.memory_space<vmem>>, vector<1x1xf32>
    %41 = vector.broadcast %40 : vector<1x1xf32> to vector<1x128xf32>
    %42 = arith.addf %39, %41 : vector<1x128xf32>
    %c0_37 = arith.constant 0 : index
    %c0_38 = arith.constant 0 : index
    %43 = vector.load %arg15[%c0_37, %c0_38] : memref<1x128xf32, #tpu.memory_space<vmem>>, vector<1x128xf32>
    tpu.vector_store %arg15[%c0_37, %c0_38], %42 {strides = array<i32>} : memref<1x128xf32, #tpu.memory_space<vmem>>, vector<1x128xf32>,
    return
  }
  func.func @transform_0(%arg0: i32) -> (i32, i32) {
    %c0_i32 = arith.constant 0 : i32
    %c0_i32_0 = arith.constant 0 : i32
    return %c0_i32, %arg0 : i32, i32
  }
  func.func @transform_1(%arg0: i32) -> (i32, i32) {
    %c0_i32 = arith.constant 0 : i32
    %c0_i32_0 = arith.constant 0 : i32
    return %c0_i32, %arg0 : i32, i32
  }
  func.func @transform_2(%arg0: i32) -> (i32, i32) {
    %c0_i32 = arith.constant 0 : i32
    %c0_i32_0 = arith.constant 0 : i32
    %c0_i32_1 = arith.constant 0 : i32
    return %c0_i32, %c0_i32_0 : i32, i32
  }
  func.func @transform_3(%arg0: i32) -> (i32, i32) {
    %c0_i32 = arith.constant 0 : i32
    %c0_i32_0 = arith.constant 0 : i32
    %c0_i32_1 = arith.constant 0 : i32
    return %c0_i32, %c0_i32_0 : i32, i32
  }
  func.func @transform_4(%arg0: i32) -> (i32, i32) {
    %c0_i32 = arith.constant 0 : i32
    %c0_i32_0 = arith.constant 0 : i32
    %c0_i32_1 = arith.constant 0 : i32
    return %c0_i32, %c0_i32_0 : i32, i32
  }
  func.func @transform_5(%arg0: i32) -> (i32, i32) {
    %c0_i32 = arith.constant 0 : i32
    %c0_i32_0 = arith.constant 0 : i32
    %c0_i32_1 = arith.constant 0 : i32
    return %c0_i32, %c0_i32_0 : i32, i32
  }
  func.func @transform_6(%arg0: i32) -> (i32, i32) {
    %c0_i32 = arith.constant 0 : i32
    %c0_i32_0 = arith.constant 0 : i32
    %c0_i32_1 = arith.constant 0 : i32
    return %c0_i32, %c0_i32_0 : i32, i32
  }
  func.func @transform_7(%arg0: i32) -> (i32, i32) {
    %c0_i32 = arith.constant 0 : i32
    %c0_i32_0 = arith.constant 0 : i32
    %c0_i32_1 = arith.constant 0 : i32
    return %c0_i32, %c0_i32_0 : i32, i32
  }
  func.func @transform_8(%arg0: i32) -> (i32, i32) {
    %c0_i32 = arith.constant 0 : i32
    %c0_i32_0 = arith.constant 0 : i32
    %c0_i32_1 = arith.constant 0 : i32
    return %c0_i32, %c0_i32_0 : i32, i32
  }
  func.func @transform_9(%arg0: i32) -> (i32, i32) {
    %c0_i32 = arith.constant 0 : i32
    %c0_i32_0 = arith.constant 0 : i32
    %c0_i32_1 = arith.constant 0 : i32
    return %c0_i32, %c0_i32_0 : i32, i32
  }
  func.func @transform_10(%arg0: i32) -> (i32, i32) {
    %c0_i32 = arith.constant 0 : i32
    %c0_i32_0 = arith.constant 0 : i32
    %c0_i32_1 = arith.constant 0 : i32
    return %c0_i32, %c0_i32_0 : i32, i32
  }
  func.func @transform_11(%arg0: i32) -> (i32, i32) {
    %c0_i32 = arith.constant 0 : i32
    %c0_i32_0 = arith.constant 0 : i32
    %c0_i32_1 = arith.constant 0 : i32
    return %c0_i32, %c0_i32_0 : i32, i32
  }
  func.func @transform_12(%arg0: i32) -> (i32, i32) {
    %c0_i32 = arith.constant 0 : i32
    %c0_i32_0 = arith.constant 0 : i32
    %c0_i32_1 = arith.constant 0 : i32
    return %c0_i32, %c0_i32_0 : i32, i32
  }
  func.func @transform_13(%arg0: i32) -> (i32, i32) {
    %c0_i32 = arith.constant 0 : i32
    %c0_i32_0 = arith.constant 0 : i32
    %c0_i32_1 = arith.constant 0 : i32
    return %c0_i32, %c0_i32_0 : i32, i32
  }
  func.func @transform_14(%arg0: i32) -> (i32, i32) {
    %c0_i32 = arith.constant 0 : i32
    %c0_i32_0 = arith.constant 0 : i32
    return %c0_i32, %arg0 : i32, i32
  }
}

</mosaic_0001>

<bundles_post_ra>
// kernel: tpu_custom_call.1
= control target key start
LH: loop header
LB: loop body
LE: loop exit
PB: predicated region body
PF: predicated region fallthrough
CT: control target
= control target key end

     0   :  { %s1844_s0 = inlined_call_operand.vmem [shape: f32[16,256], index: 0, kind: input, shape index: {}]   ;;  %s1845_s1 = inlined_call_operand.vmem [shape: f32[4,256], index: 1, kind: input, shape index: {}]   ;;  %s1846_s2 = inlined_call_operand.vmem [shape: f32[16,16], index: 2, kind: input, shape index: {}]   ;;  %s1847_s3 = inlined_call_operand.vmem [shape: f32[16,1], index: 3, kind: input, shape index: {}]   ;;  %s1848_s4 = inlined_call_operand.vmem [shape: f32[32,16], index: 4, kind: input, shape index: {}]   ;;  %s1849_s5 = inlined_call_operand.vmem [shape: f32[32,1], index: 5, kind: input, shape index: {}]   ;;  %s1850_s6 = inlined_call_operand.vmem [shape: f32[8,4], index: 6, kind: input, shape index: {}]   ;;  %s1851_s7 = inlined_call_operand.vmem [shape: f32[8,1], index: 7, kind: input, shape index: {}]   ;;  %s1852_s8 = inlined_call_operand.vmem [shape: f32[32,8], index: 8, kind: input, shape index: {}]   ;;  %s1853_s9 = inlined_call_operand.vmem [shape: f32[32,1], index: 9, kind: input, shape index: {}]   ;;  %s1854_s10 = inlined_call_operand.vmem [shape: f32[32,64], index: 10, kind: input, shape index: {}]   ;;  %s1855_s11 = inlined_call_operand.vmem [shape: f32[32,1], index: 11, kind: input, shape index: {}]   ;;  %s1856_s12 = inlined_call_operand.vmem [shape: f32[1,32], index: 12, kind: input, shape index: {}]   ;;  %s1857_s13 = inlined_call_operand.<no memory space> [shape: f32[1,1], index: 13, kind: input, shape index: {}]   ;;  %s1858_s14 = inlined_call_operand.hbm [shape: f32[1,256], index: 14, kind: output, shape index: {}]  }
   0x1   :  { %1864 = sst [smem:[#allocation12_spill]] %s1844_s0  ;;  %v19_v0 = vstv %s1857_s13 }
   0x2   :  { %20 = vst [vmem:[#allocation2] sm:$0x1] %v19_v0 }
   0x3   :  { %21 = vsyncpa [#allocation5], 0 }
   0x4   :  { %23 = vsyncpa [#allocation5 + $0x1], 0  ;;  %s1617_s15 = smov 0   ;;  %s1619_s16 = smov 0  }
   0x5   :  { %s1621_s17 = smov 0   ;;  %s1623_s18 = smov 0  }
   0x6 LB: > { %1865 = sst [smem:[#allocation7_spill]] %s1524_s16  ;;  %s1638_s13 = sadd.s32 4294967295, %s1532_s18   ;;  %s1532_s18 = sphi %s1623_s18, %s1874_s18   ;;  %s1528_s17 = sphi %s1621_s17, %s1877_s17   ;;  %s1524_s16 = sphi %s1619_s16, %s1876_s16   ;;  %s1520_s15 = sphi %s1617_s15, %s1875_s15  }
   0x7   : > { %1866 = sst [smem:[#allocation8_spill]] %s1528_s17  ;;  %s1270_s19 = sadd.s32 4294967294, %s1532_s18  }
   0x8   : > { %1867 = sst [smem:[#allocation9_spill]] %s1532_s18  ;;  %s1642_s20 = sadd.s32 1, %s1532_s18  }
   0x9   : > { %1868 = sst [smem:[#allocation10_spill]] %s1642_s20  ;;  %s36_s21 = sadd.s32 1, %s1528_s17 }
   0xa   : > { %s33_s22 = ssub.s32 %s1532_s18, %s1642_s20  ;;  %p43_p0 = scmp.ne.s32.totalorder %s1528_s17, %s1524_s16 }
   0xb   : > { %p34_p1 = scmp.eq.s32.totalorder %s33_s22, 0  ;;  %p44_p2 = scmp.eq.s32.totalorder %s1532_s18, 0 }
   0xc   : > { %p351_p3 = scmp.eq.s32.totalorder %s1638_s13, 1  ;;  %p356_p4 = scmp.ne.s32.totalorder %s1524_s16, %s1520_s15 }
   0xd   : > { %s1654_s23 = scalar_select %p34_p1, %s1528_s17, %s36_s21  }
   0xe   : > { %p45_p5 = por %p44_p2, %p43_p0  ;;  %p1656_p6 = por %p351_p3, %p43_p0 }
   0xf   : > { %1869 = sst [smem:[#allocation11_spill]] %s1654_s23  ;;  %p357_p7 = scmp.eq.s32.totalorder %s1270_s19, 1 }
  0x10   : > { %p1272_p9 = scmp.ge.s32.totalorder %s1532_s18, 2 }
  0x11   : > { %p1660_p8 = por %p357_p7, %p356_p4 }
  0x12   : > { %409 = sbr.rel (%p1272_p9) target bundleno = 36 (0x24), region = 64 }
  0x19   : > { %412 = sbr.rel (!%p45_p5) target bundleno = 36 (0x24), region = 68  ;;  %s414_s26 = sand.u32 (%p45_p5), 1, %s1528_s17  }
  0x1a   : > { %s1274_s27 = sshll.u32 (%p45_p5), %s1532_s18, 3  ;;  %s1273_s28 = sshll.u32 (%p45_p5), %s414_s26, 4 }
  0x1b   : > { %s1872_s0 = sld [smem:[#allocation12_spill]] (%p45_p5)  ;;  %s416_s19 = scalar_lea.vmem (%p45_p5), [#allocation3], %s1273_s28 }
  0x21   : > { %s418_s21 = scalar_lea.vmem %s1872_s0, %s1274_s27 }
  0x22   : > { %v448_v1 = vld [vmem:[%s418_s21] sm:$0xff]  ;;  %v450_v2 = vld [vmem:[%s418_s21 + $0x10] sm:$0xff] }
  0x23   : > { %449 = vst [vmem:[%s416_s19] sm:$0xff] %v448_v1  ;;  %451 = vst [vmem:[%s416_s19 + $0x8] sm:$0xff] %v450_v2 }
  0x24 PF: > { %p1275_p10 = scmp.ge.s32.totalorder %s1532_s18, 1  ;;  %p463_p11 = scmp.lt.s32.totalorder %s1532_s18, 3 }
  0x26   : > { %p464_p12 = pnand %p1275_p10, %p463_p11 }
  0x27   : > { %s1675_s22 = sand.u32 (!%p464_p12), 1, %s1524_s16   ;;  %v524_v3 = vld [vmem:[%s1846_s2] sm:$0xff] (!%p464_p12)  ;;  %vm538_vm0 = vcmask (!%p464_p12), 130048   ;;  %p518_p13 = scmp.lt.s32.totalorder (!%p464_p12), %s1638_s13, 1  ;;  %v1534_v4 = vmov (!%p464_p12), 0   ;;  %v527_v9 = vld [vmem:[%s1847_s3 + $0x8] sm:$0xff] (!%p464_p12) }
  0x28   : > { %467 = sbr.rel (%p464_p12) target bundleno = 961 (0x3c1), region = 110  ;;  %s1276_s28 = sshll.u32 (!%p464_p12), %s1675_s22, 4  ;;  %1336 = vmatprep.mubr.msk.f32.mxu0 (!%p464_p12), %vm538_vm0, %v524_v3  ;;  %1468 = vset.pattern.permute.xlu0 (!%p464_p12), %v1534_v4  ;;  %v526_v5 = vld [vmem:[%s1847_s3] sm:$0xff] (!%p464_p12)  ;;  %v525_v12 = vld [vmem:[%s1846_s2 + $0x8] sm:$0xff] (!%p464_p12)  ;;  %v1535_v13 = vmov (!%p464_p12), 0.0   ;;  %vm763_vm1 = vcmask (!%p464_p12), 1043456  }
  0x29   : > { %1469 = vset.pattern.permute.xlu1 (!%p464_p12), %v1534_v4  ;;  %s472_s21 = scalar_lea.vmem (!%p464_p12), [#allocation3], %s1276_s28  ;;  %530 = vperm.xlu0 (!%p464_p12), %1468, %v526_v5   ;;  %v753_v10 = vld [vmem:[%s1851_s7] sm:$0xff] (!%p464_p12)  ;;  %v627_v15 = vld [vmem:[%s1849_s5 + $0x8] sm:$0xff] (!%p464_p12)  ;;  %v628_v16 = vld [vmem:[%s1849_s5 + $0x10] sm:$0xff] (!%p464_p12)  ;;  %vm1536_vm2 = vmmov (!%p464_p12), 0   ;;  %vm759_vm3 = vcmask (!%p464_p12), 31744  }
  0x2a   : > { %v522_v6 = vld [vmem:[%s472_s21] sm:$0xff] (!%p464_p12)  ;;  %v523_v7 = vld [vmem:[%s472_s21 + $0x8] sm:$0xff] (!%p464_p12)  ;;  %756 = vperm.xlu1 (!%p464_p12), %1469, %v753_v10   ;;  %vm866_vm4 = vcmask (!%p464_p12), 64512   ;;  %vm996_vm5 = vcmask (!%p464_p12), 523264   ;;  %vm1109_vm6 = vcmask (!%p464_p12), 261120   ;;  %s517_s21 = scalar_lea.vmem (!%p464_p12), [#allocation4], %s1675_s22 }
  0x2b   : > { %v1395_v8 = vpack.c.bf16 (!%p464_p12), %v523_v7, %v522_v6  ;;  %v626_v11 = vld [vmem:[%s1849_s5] sm:$0xff] (!%p464_p12)  ;;  %v629_v18 = vld [vmem:[%s1849_s5 + $0x18] sm:$0xff] (!%p464_p12)  ;;  %v843_v20 = vld [vmem:[%s1853_s9 + $0x8] sm:$0xff] (!%p464_p12)  ;;  %s1197_s0 = sshll.u32 (!%p464_p12), %s517_s21, 4  ;;  %s1185_s18 = scalar_lea.sflag (!%p464_p12), [#allocation5], %s1675_s22  ;;  %s1802_s0 = int_to_ptr.vmem [resolvable:$true] %s1197_s0 }
  0x2c   : > { %v752_v17 = vld [vmem:[%s1850_s6] sm:$0xff] (!%p464_p12)  ;;  %v844_v21 = vld [vmem:[%s1853_s9 + $0x10] sm:$0xff] (!%p464_p12)  ;;  %v845_v22 = vld [vmem:[%s1853_s9 + $0x18] sm:$0xff] (!%p464_p12)  ;;  %s1470_s20 = scalar_lea.vmem (!%p464_p12), %s1802_s0, 16 }
  0x2d   : > { %1396 = vmatprep.subr.bf16.mxu0 (!%p464_p12), %v1395_v8  ;;  %535 = vperm.xlu0 (!%p464_p12), %1468, %v527_v9   ;;  %v842_v19 = vld [vmem:[%s1853_s9] sm:$0xff] (!%p464_p12)  ;;  %v973_v24 = vld [vmem:[%s1855_s11 + $0x8] sm:$0xff] (!%p464_p12)  ;;  %v974_v25 = vld [vmem:[%s1855_s11 + $0x10] sm:$0xff] (!%p464_p12)  ;;  %p1471_p0 = scmp.ne.s32.totalorder (!%p464_p12), %s1802_s0, %s1470_s20 }
  0x2e   : > { %1398 = vmatpush3.bf16.msra.mxu0 (!%p464_p12), %v1395_v8  ;;  %632 = vperm.xlu1 (!%p464_p12), %1469, %v626_v11   ;;  %v972_v23 = vld [vmem:[%s1855_s11] sm:$0xff] (!%p464_p12)  ;;  %v975_v26 = vld [vmem:[%s1855_s11 + $0x18] sm:$0xff] (!%p464_p12)  ;;  %v839_v44 = vld [vmem:[%s1852_s8 + $0x8] sm:$0xff] (!%p464_p12) }
  0x2f   : > { %s519_s19 = scalar_select %p518_p13, %s1638_s13, 1  ;;  %1349 = vmatprep.subr.mxu0 %v1535_v13  ;;  %v1099_v27 = vld [vmem:[#allocation2] sm:$0x1]  ;;  %v623_v45 = vld [vmem:[%s1848_s4 + $0x8] sm:$0xff]  ;;  %v840_v46 = vld [vmem:[%s1852_s8 + $0x10] sm:$0xff] }
  0x30   : > { %v838_v28 = vld [vmem:[%s1852_s8] sm:$0xff]  ;;  %v624_v47 = vld [vmem:[%s1848_s4 + $0x10] sm:$0xff]  ;;  %v841_v48 = vld [vmem:[%s1852_s8 + $0x18] sm:$0xff]  ;;  %p1472_p1 = pnand %p1471_p0, %p1656_p6 }
  0x31   : > { %s1277_s17 = sshll.u32 %s519_s19, 2  ;;  %1337 = vmatmul.mubr.msk.f32.vlgmr.msra.gmra.mrb[0].mxu0 %vm538_vm0, %v525_v12  ;;  %637 = vperm.xlu0 %1468, %v627_v15   ;;  %v622_v29 = vld [vmem:[%s1848_s4] sm:$0xff]  ;;  %v625_v49 = vld [vmem:[%s1848_s4 + $0x18] sm:$0xff] }
  0x32   : > { %s521_s28 = scalar_lea.vmem %s1845_s1, %s1277_s17  ;;  %1351 = vmatprep.mubr.msk.f32.mxu0 %vm1536_vm2, %v1535_v13  ;;  %642 = vperm.xlu1 %1469, %v628_v16   ;;  %v968_v50 = vld [vmem:[%s1854_s10] sm:$0xff]  ;;  %p1473_p2 = pneg %p1472_p1 }
  0x33   : > { %v751_v14 = vld [vmem:[%s521_s28] sm:$0xf]  ;;  %1343 = vmatprep.mubr.msk.f32.mxu1 %vm538_vm0, %v622_v29  ;;  %s1295_s28 = sshll.u32 %s1638_s13, 4  ;;  %s1538_s13 = smov [#allocation4]  }
  0x34   : > { %1350 = vmatpush3.msk.msra.mxu0 %vm763_vm1, %v751_v14  ;;  %s1800_s17 = scalar_lea.hbm %s1858_s14, %s1295_s28  ;;  %s1474_s19 = sshll.u32 %s1538_s13, 4  ;;  %s1475_s19 = int_to_ptr.vmem [resolvable:$false] %s1474_s19 }
  0x35   : > { %1352 = vmatmul.mubr.msk.f32.vlgmr.msra.gmra.mrb[2].mxu0 %vm759_vm3, %v752_v17  ;;  %647 = vperm.xlu0 %1468, %v629_v18   ;;  %s1476_s26 = scalar_lea.vmem %s1475_s19, 32  ;;  %p1477_p3 = scmp.lt.s32.totalorder %s1802_s0, %s1475_s19 }
  0x36   : > { %848 = vperm.xlu1 %1469, %v842_v19   ;;  %1356 = vmatprep.mubr.msk.f32.mxu0 %vm866_vm4, %v838_v28  ;;  %p1478_p4 = scmp.lt.s32.totalorder %s1476_s26, %s1470_s20 }
  0x38   : > { %p1479_p5 = por %p1478_p4, %p1477_p3 }
  0x39   : > { %853 = vperm.xlu0 %1468, %v843_v20  }
  0x3a   : > { %858 = vperm.xlu1 %1469, %v844_v21   ;;  %p1480_p7 = pnand %p1479_p5, %p1473_p2 }
  0x3d   : > { %863 = vperm.xlu0 %1468, %v845_v22  }
  0x3e   : > { %978 = vperm.xlu1 %1469, %v972_v23   ;;  %v969_v23 = vld [vmem:[%s1854_s10 + $0x8] sm:$0xff] }
  0x41   : > { %983 = vperm.xlu0 %1468, %v973_v24   ;;  %v970_v24 = vld [vmem:[%s1854_s10 + $0x10] sm:$0xff] }
  0x42   : > { %988 = vperm.xlu1 %1469, %v974_v25   ;;  %v971_v25 = vld [vmem:[%s1854_s10 + $0x18] sm:$0xff] }
  0x45   : > { %993 = vperm.xlu0 %1468, %v975_v26   ;;  %v1537_v26 = vmov 0.0|0.0  }
  0x46   : > { %1102 = vperm.xlu1 %1469, %v1099_v27  }
  0xa8   : > { %v531_v30 = vpop.permute.xlu0 %530 }
  0xa9   : > { %v757_v37 = vpop.permute.xlu1 %756 }
  0xac   : > { %v536_v31 = vpop.permute.xlu0 %535 }
  0xad   : > { %v633_v51 = vpop.permute.xlu1 %632 }
  0xb0   : > { %v638_v52 = vpop.permute.xlu0 %637 }
  0xb1   : > { %v643_v53 = vpop.permute.xlu1 %642 }
  0xb4   : > { %v648_v54 = vpop.permute.xlu0 %647 }
  0xb5   : > { %v849_v55 = vpop.permute.xlu1 %848 }
  0xb8   : > { %v854_v56 = vpop.permute.xlu0 %853 }
  0xb9   : > { %v859_v0 = vpop.permute.xlu1 %858 }
  0xbc   : > { %v864_v3 = vpop.permute.xlu0 %863 }
  0xbd   : > { %v979_v28 = vpop.permute.xlu1 %978 }
  0xc0   : > { %v984_v27 = vpop.permute.xlu0 %983 }
 0x104   : > { %v1338_v32 = vpop.f32.mrb[0].mxu0 }
 0x105   : > { %v617_v33 = vadd.f32 %v1338_v32, %v536_v31  ;;  %v611_v34 = vpop.f32.mrb[1].mxu0 }
 0x106   : > { %v612_v35 = vadd.f32 %v611_v34, %v531_v30  ;;  %v994_v34 = vpop.permute.xlu0 %993 }
 0x107   : > { %v621_v36 = vmax.f32 %v617_v33, 0.0 }
 0x108   : > { %v620_v38 = vmax.f32 %v612_v35, 0.0  ;;  %v833_v39 = vpop.f32.mrb[2].mxu0 }
 0x109   : > { %v834_v40 = vadd.f32 %v833_v39, %v757_v37  ;;  %v1353_v41 = vpop.f32.mrb[3].mxu0  ;;  %v989_v37 = vpop.permute.xlu1 %988 }
 0x10a   : > { %v1399_v42 = vpack.c.bf16 %v621_v36, %v620_v38 }
 0x10b   : > { %v837_v43 = vmax.f32 %v834_v40, 0.0 }
 0x10c   : > { %1400 = vmatprep.subr.bf16.mxu1 %v1399_v42 }
 0x10d   : > { %1402 = vmatpush3.bf16.msra.mxu1 %v1399_v42  ;;  %1354 = vmatprep.subr.mxu0 %v837_v43 }
 0x10e   : > { %1355 = vmatpush3.msra.mxu0 %v837_v43 }
 0x10f   : > { %1357 = vmatmul.mubr.msk.f32.vlgmr.msra.gmra.mrb[4].mxu0 %vm866_vm4, %v839_v44  ;;  %1419 = vmatprep.subr.bf16.mxu0 %v1537_v26 }
 0x110   : > { %1344 = vmatmul.mubr.msk.f32.vlgmr.msra.gmra.mrb[0].mxu1 %vm538_vm0, %v623_v45  ;;  %1359 = vmatprep.mubr.msk.f32.mxu0 %vm866_vm4, %v840_v46  ;;  %v1098_v45 = vld [vmem:[%s1856_s12] sm:$0x1]  ;;  %v1105_v46 = vlaneseq }
 0x111   : > { %1346 = vmatprep.mubr.msk.f32.mxu1 %vm538_vm0, %v624_v47 }
 0x112   : > { %v1106_v47 = vshrl.u32 %v1105_v46, 7 }
 0x113   : > { %1360 = vmatmul.mubr.msk.f32.gmra.mrb[6].mxu0 %vm866_vm4, %v841_v48 }
 0x114   : > { %1347 = vmatmul.mubr.msk.f32.gmra.mrb[2].mxu1 %vm538_vm0, %v625_v49  ;;  %1392 = vmatprep.mubr.msk.f32.mxu0 %vm1536_vm2, %v1535_v13  ;;  %v1107_v48 = vsub.s32 0, %v1106_v47  ;;  %v1103_v49 = vpop.permute.xlu1 %1102 }
 0x115   : > { %1378 = vmatprep.mubr.msk.f32.mxu1 %vm996_vm5, %v968_v50 }
 0x116   : > { %v1108_v50 = vrot.slane %v1103_v49, %v1107_v48 }
 0x1e2   : > { %v1358_v57 = vpop.f32.mrb[4].mxu0 }
 0x1e3   : > { %v951_v58 = vadd.f32 %v1358_v57, %v854_v56  ;;  %v1345_v59 = vpop.f32.mrb[0].mxu1  ;;  %v945_v60 = vpop.f32.mrb[5].mxu0 }
 0x1e4   : > { %v734_v61 = vadd.f32 %v1345_v59, %v638_v52  ;;  %v946_v62 = vadd.f32 %v945_v60, %v849_v55  ;;  %v728_v63 = vpop.f32.mrb[1].mxu1 }
 0x1e5   : > { %v965_v1 = vmax.f32 %v951_v58, 0.0  ;;  %v729_v2 = vadd.f32 %v728_v63, %v633_v51 }
 0x1e6   : > { %v748_v4 = vmax.f32 %v734_v61, 0.0  ;;  %v964_v5 = vmax.f32 %v946_v62, 0.0  ;;  %v1361_v6 = vpop.f32.mrb[6].mxu0 }
 0x1e7   : > { %v747_v7 = vmax.f32 %v729_v2, 0.0  ;;  %v961_v8 = vadd.f32 %v1361_v6, %v864_v3  ;;  %v1348_v9 = vpop.f32.mrb[2].mxu1  ;;  %v955_v10 = vpop.f32.mrb[7].mxu0 }
 0x1e8   : > { %v1411_v11 = vpack.c.bf16 %v965_v1, %v964_v5  ;;  %v744_v12 = vadd.f32 %v1348_v9, %v648_v54  ;;  %v956_v13 = vadd.f32 %v955_v10, %v859_v0  ;;  %v738_v14 = vpop.f32.mrb[3].mxu1 }
 0x1e9   : > { %v1403_v15 = vpack.c.bf16 %v748_v4, %v747_v7  ;;  %v967_v16 = vmax.f32 %v961_v8, 0.0  ;;  %v739_v17 = vadd.f32 %v738_v14, %v643_v53 }
 0x1ea   : > { %v750_v18 = vmax.f32 %v744_v12, 0.0  ;;  %v966_v19 = vmax.f32 %v956_v13, 0.0 }
 0x1eb   : > { %v749_v20 = vmax.f32 %v739_v17, 0.0  ;;  %1404 = vmatprep.subr.bf16.mxu1 %v1403_v15 }
 0x1ec   : > { %v1415_v21 = vpack.c.bf16 %v967_v16, %v966_v19  ;;  %1406 = vmatpush3.bf16.msra.mxu1 %v1403_v15 }
 0x1ed   : > { %v1407_v22 = vpack.c.bf16 %v750_v18, %v749_v20 }
 0x1ef   : > { %1408 = vmatprep.subr.bf16.mxu1 %v1407_v22 }
 0x1f0   : > { %1410 = vmatpush3.bf16.msra.mxu1 %v1407_v22 }
 0x1f1   : > { %1412 = vmatprep.subr.bf16.mxu1 %v1411_v11 }
 0x1f4   : > { %1414 = vmatpush3.bf16.msra.mxu1 %v1411_v11 }
 0x1f5   : > { %1416 = vmatprep.subr.bf16.mxu1 %v1415_v21 }
 0x1f8   : > { %1418 = vmatpush3.bf16.msra.mxu1 %v1415_v21 }
 0x1fb   : > { %1379 = vmatmul.mubr.msk.f32.vlgmr.msra.gmra.mrb[4].mxu1 %vm996_vm5, %v969_v23 }
 0x1fc   : > { %1381 = vmatprep.mubr.msk.f32.mxu1 %vm996_vm5, %v970_v24 }
 0x1ff   : > { %1382 = vmatmul.mubr.msk.f32.gmra.mrb[6].mxu1 %vm996_vm5, %v971_v25 }
 0x2ce   : > { %v1380_v29 = vpop.f32.mrb[4].mxu1 }
 0x2cf   : > { %v1081_v30 = vadd.f32 %v1380_v29, %v984_v27  ;;  %v1075_v31 = vpop.f32.mrb[5].mxu1 }
 0x2d0   : > { %v1076_v32 = vadd.f32 %v1075_v31, %v979_v28 }
 0x2d1   : > { %v1095_v33 = vmax.f32 %v1081_v30, 0.0 }
 0x2d2   : > { %v1094_v35 = vmax.f32 %v1076_v32, 0.0  ;;  %v1383_v36 = vpop.f32.mrb[6].mxu1 }
 0x2d3   : > { %v1091_v38 = vadd.f32 %v1383_v36, %v994_v34  ;;  %v1085_v39 = vpop.f32.mrb[7].mxu1 }
 0x2d4   : > { %v1420_v40 = vpack.c.bf16 %v1095_v33, %v1094_v35  ;;  %v1086_v41 = vadd.f32 %v1085_v39, %v989_v37 }
 0x2d5   : > { %v1097_v42 = vmax.f32 %v1091_v38, 0.0 }
 0x2d6   : > { %v1096_v43 = vmax.f32 %v1086_v41, 0.0  ;;  %1421 = vmatpush3.bf16.msra.mxu0 %v1420_v40 }
 0x2d7   : > { %1422 = vmatprep.subr.bf16.mxu0 %v1537_v26 }
 0x2d8   : > { %v1423_v44 = vpack.c.bf16 %v1097_v42, %v1096_v43 }
 0x2da   : > { %1424 = vmatpush3.bf16.msra.mxu0 %v1423_v44 }
 0x2dd   : > { %1393 = vmatmul.mubr.msk.f32.vlgmr.msra.gmra.mrb[8].mxu0 %vm1109_vm6, %v1098_v45 }
 0x3b0   : > { %v1179_v51 = vpop.f32.mrb[8].mxu0 }
 0x3b1   : > { %v1180_v52 = vadd.f32 %v1179_v51, %v1108_v50  ;;  %v1394_v53 = vpop.f32.mrb[9].mxu0 }
 0x3b3   : > { %1183 = vst [vmem:[%s517_s21] sm:$0x1] %v1180_v52 }
 0x3b4   : > { %1483 = shalt.err (!%p1480_p7)
}
 0x3b5   : > { %s1484_s22 = scalar_lea.hbm %s1800_s17, 16  ;;  %s1488_s30 = scalar_lea.hbm %s1858_s14, 32 }
 0x3b6   : > { %p1485_p10 = scmp.ne.s32.totalorder %s1800_s17, %s1484_s22  ;;  %p1489_p13 = scmp.lt.u32.totalorder %s1800_s17, %s1858_s14 }
 0x3b7   : > { %p1490_p0 = scmp.lt.u32.totalorder %s1488_s30, %s1484_s22  ;;  %p1492_p2 = scmp.lt.u32.totalorder %s1484_s22, %s1800_s17 }
 0x3b8   : > { %p1486_p11 = pnand %p1485_p10, %p1656_p6 }
 0x3b9   : > { %p1491_p1 = por %p1490_p0, %p1489_p13 }
 0x3ba   : > { %p1487_p12 = pneg %p1486_p11 }
 0x3bb   : > { %p1493_p3 = por %p1492_p2, %p1491_p1 }
 0x3bd   : > { %p1494_p4 = pnand %p1493_p3, %p1487_p12 }
 0x3bf   : > { %1497 = shalt.err (!%p1494_p4)
}
 0x3c0   : > { %1425 = dma.vmem_to_hbm [thread:$0]  (%p1656_p6), %s1802_s0, 16, %s1800_s17, %s1185_s18  }
 0x3c1 PF: > { %s1209_s16 = sand.u32 1, %s1520_s15   ;;  %p1428_p5 = pnand %p1272_p9, %p1660_p8 }
 0x3c2   : > { %s1210_s20 = scalar_lea.sflag [#allocation5], %s1209_s16 }
 0x3c3   : > { %1515 = dma.done.wait (!%p1428_p5), %s1210_s20, 16  }
 0x3c4   : > { %1517 = vsyncadd (!%p1428_p5), %s1210_s20, 4294967280  ;;  %s1874_s18 = sld [smem:[#allocation10_spill]]  ;;  %s1875_s15 = sld [smem:[#allocation7_spill]] }
 0x3c5   : > { %s1876_s16 = sld [smem:[#allocation8_spill]]  ;;  %s1877_s17 = sld [smem:[#allocation11_spill]] }
 0x3ca   : > { %p26_p7 = scmp.ge.s32.totalorder %s1874_s18, 4  }
 0x3cc   :  { %28 = sbr.rel (!%p26_p7) target bundleno = 6 (0x6), region = 157 }
 0x3d3   :  { %1214 = vsyncpa [#allocation5], 1 }
 0x3d4   :  { %1216 = vsyncpa [#allocation5 + $0x1], 1 }

</bundles_post_ra>
